<compile_context>
chip_gen: v6e
topology: v6e:2x2x1
jax: 0.10.0
libtpu: 0.0.40
codegen_flags: <defaults>
</compile_context>

<pallas_src>
import jax
import jax.numpy as jnp
from jax.experimental import pallas as pl
from jax.experimental.pallas import tpu as pltpu


def _round_up(x, m):
    return (x + m - 1) // m * m


def decoder_kernel(obs_ref, unobs_ref, item_ref,
                   w1a_ref, w1b_ref, b1_ref, w1o_ref, b1o_ref,
                   w2_ref, b2_ref, w2o_ref, b2o_ref,
                   wpa_ref, wpb_ref, wpc_ref, bp_ref,
                   wpo_ref, bpo_ref,
                   out_ref):
    f32 = jnp.float32
    obs = obs_ref[...]        # (tile, user_dim)   f32
    unobs = unobs_ref[...]    # (tile, unobs_dim)  f32
    item = item_ref[...]      # (tile, item_dim)   f32

    # z1 branch: tanh(Linear(concat(obs, unobs))) -> Linear
    # (row-split weight: concat-Linear == obs@w1a + unobs@w1b, exact)
    h1 = jnp.tanh(jnp.dot(obs, w1a_ref[...], preferred_element_type=f32)
                  + jnp.dot(unobs, w1b_ref[...], preferred_element_type=f32)
                  + b1_ref[...])
    z1 = jnp.dot(h1, w1o_ref[...], preferred_element_type=f32) + b1o_ref[...]

    # z2 branch: tanh(Linear(unobs)) -> Linear
    h2 = jnp.tanh(jnp.dot(unobs, w2_ref[...], preferred_element_type=f32)
                  + b2_ref[...])
    z2 = jnp.dot(h2, w2o_ref[...], preferred_element_type=f32) + b2o_ref[...]

    # prediction head: tanh(Linear(concat(z1, z2, item))) -> Linear
    hp = jnp.tanh(jnp.dot(z1, wpa_ref[...], preferred_element_type=f32)
                  + jnp.dot(z2, wpb_ref[...], preferred_element_type=f32)
                  + jnp.dot(item, wpc_ref[...], preferred_element_type=f32)
                  + bp_ref[...])
    out_ref[...] = (jnp.dot(hp, wpo_ref[...], preferred_element_type=f32)
                    + bpo_ref[...])                      # (tile, 2) f32


def decoder_forward(obs_feature, unobs_feature, item_feature, params,
                    *, batch_tile=8192):
    B = obs_feature.shape[0]
    out_dim = params["bpo"].shape[-1]

    # Batch tile: multiple of 16 rows, capped by the (rounded-up) batch, and
    # capped again so the grid has >= 2 steps when B allows it (v7x: keeps
    # both TensorCores busy under dimension_semantics=("parallel",)).
    tile = min(batch_tile, _round_up(B, 16))
    tile = max(16, _round_up(tile, 16))
    if B > 16:
        tile = min(tile, _round_up(-(-B // 2), 16))
    Bp = _round_up(B, tile)

    def pad_batch(x):
        x = x.astype(jnp.float32)
        return jnp.pad(x, ((0, Bp - B), (0, 0))) if Bp != B else x

    obs = pad_batch(obs_feature)
    unobs = pad_batch(unobs_feature)
    item = pad_batch(item_feature)

    weights = (
        params["w1a"], params["w1b"], params["b1"], params["w1o"], params["b1o"],
        params["w2"], params["b2"], params["w2o"], params["b2o"],
        params["wpa"], params["wpb"], params["wpc"], params["bp"],
        params["wpo"], params["bpo"],
    )
    weights = tuple(w.astype(jnp.float32) for w in weights)

    act_map = lambda i: (i, 0)       # batch-tiled activations / output
    const_map = lambda i: (0, 0)     # weights: same block every step -> resident
    act_specs = [pl.BlockSpec((tile, a.shape[-1]), act_map)
                 for a in (obs, unobs, item)]
    weight_specs = [pl.BlockSpec(w.shape, const_map) for w in weights]

    out = pl.pallas_call(
        decoder_kernel,
        out_shape=jax.ShapeDtypeStruct((Bp, out_dim), jnp.float32),
        grid_spec=pltpu.PrefetchScalarGridSpec(
            num_scalar_prefetch=0,
            grid=(Bp // tile,),
            in_specs=act_specs + weight_specs,
            out_specs=pl.BlockSpec((tile, out_dim), act_map),
        ),
        compiler_params=pltpu.CompilerParams(
            dimension_semantics=("parallel",),       # shard batch over TCs (v7x)
            vmem_limit_bytes=32 * 1024 * 1024,       # > v5e's 16 MiB default
        ),
    )(obs, unobs, item, *weights)

    return out[:B] if Bp != B else out


def decoder_reference(obs, unobs, item, p):
    # Pure-JAX f32 reference mirroring the PyTorch forward exactly.
    z1 = jnp.tanh(jnp.concatenate([obs, unobs], -1)
                  @ jnp.concatenate([p["w1a"], p["w1b"]], 0) + p["b1"])
    z1 = z1 @ p["w1o"] + p["b1o"]
    z2 = jnp.tanh(unobs @ p["w2"] + p["b2"])
    z2 = z2 @ p["w2o"] + p["b2o"]
    x = jnp.concatenate([z1, z2, item], -1)
    wp = jnp.concatenate([p["wpa"], p["wpb"], p["wpc"]], 0)
    x = jnp.tanh(x @ wp + p["bp"])
    return x @ p["wpo"] + p["bpo"]


def init_params(key, user_dim, item_dim, unobs_dim,
                z1_hidden_dim, z1_dim, z2_hidden_dim, z2_dim,
                predict_hidden_dim):
    ks = jax.random.split(key, 12)

    def w(k, i, o):
        return jax.random.normal(k, (i, o), jnp.float32) * 0.1

    def b(k, o):
        return jax.random.normal(k, (1, o), jnp.float32) * 0.1

    return {
        # z1_hidden_layer: Linear(user_dim + unobs_dim, z1_hidden_dim), row-split
        "w1a": w(ks[0], user_dim, z1_hidden_dim),
        "w1b": w(ks[1], unobs_dim, z1_hidden_dim),
        "b1":  b(ks[2], z1_hidden_dim),
        # z1_output_layer
        "w1o": w(ks[3], z1_hidden_dim, z1_dim),
        "b1o": b(ks[4], z1_dim),
        # z2_hidden_layer / z2_output_layer
        "w2":  w(ks[5], unobs_dim, z2_hidden_dim),
        "b2":  b(ks[6], z2_hidden_dim),
        "w2o": w(ks[7], z2_hidden_dim, z2_dim),
        "b2o": b(ks[8], z2_dim),
        # predict_hidden_layer: Linear(z1_dim + z2_dim + item_dim, ph), row-split
        "wpa": w(ks[9], z1_dim, predict_hidden_dim),
        "wpb": w(ks[10], z2_dim, predict_hidden_dim),
        "wpc": w(ks[11], item_dim, predict_hidden_dim),
        "bp":  b(jax.random.fold_in(key, 100), predict_hidden_dim),
        # predict_output_layer: Linear(ph, 2)
        "wpo": w(jax.random.fold_in(key, 101), predict_hidden_dim, 2),
        "bpo": b(jax.random.fold_in(key, 102), 2),
    }


if __name__ == "__main__":
    key = jax.random.PRNGKey(0)
    kx, ku, ki, kp = jax.random.split(key, 4)

    # Small config consistent with the module's __init__.
    B = 24
    user_dim, item_dim, unobs_dim = 16, 12, 8
    z1_hidden_dim, z1_dim = 32, 16
    z2_hidden_dim, z2_dim = 24, 8
    predict_hidden_dim = 32

    obs_feature = jax.random.normal(kx, (B, user_dim), jnp.float32)
    unobs_feature = jax.random.normal(ku, (B, unobs_dim), jnp.float32)
    item_feature = jax.random.normal(ki, (B, item_dim), jnp.float32)

    params = init_params(kp, user_dim, item_dim, unobs_dim,
                         z1_hidden_dim, z1_dim, z2_hidden_dim, z2_dim,
                         predict_hidden_dim)

    # Small batch_tile so the demo exercises a real multi-step pipelined grid
    # (grid=(2,)) plus batch-tail padding + wrapper-side slicing.
    out = decoder_forward(obs_feature, unobs_feature, item_feature, params,
                          batch_tile=16)
    out = jax.block_until_ready(out)

    ref = decoder_reference(obs_feature, unobs_feature, item_feature, params)
    assert out.shape == (B, 2)
    # All-f32 MXU path -> much tighter tolerance than the bf16 version.
    assert jnp.allclose(out, ref, atol=1e-2, rtol=1e-2), \
        float(jnp.max(jnp.abs(out - ref)))

    print("KERNEL_OK")
</pallas_src>

<mosaic_0001>
module attributes {stable_mosaic.version = 11 : i64} {
  func.func @decoder_kernel(%arg0: i32, %arg1: memref<16x16xf32, #tpu.memory_space<vmem>>, %arg2: memref<16x8xf32, #tpu.memory_space<vmem>>, %arg3: memref<16x12xf32, #tpu.memory_space<vmem>>, %arg4: memref<16x32xf32, #tpu.memory_space<vmem>>, %arg5: memref<8x32xf32, #tpu.memory_space<vmem>>, %arg6: memref<1x32xf32, #tpu.memory_space<vmem>>, %arg7: memref<32x16xf32, #tpu.memory_space<vmem>>, %arg8: memref<1x16xf32, #tpu.memory_space<vmem>>, %arg9: memref<8x24xf32, #tpu.memory_space<vmem>>, %arg10: memref<1x24xf32, #tpu.memory_space<vmem>>, %arg11: memref<24x8xf32, #tpu.memory_space<vmem>>, %arg12: memref<1x8xf32, #tpu.memory_space<vmem>>, %arg13: memref<16x32xf32, #tpu.memory_space<vmem>>, %arg14: memref<8x32xf32, #tpu.memory_space<vmem>>, %arg15: memref<12x32xf32, #tpu.memory_space<vmem>>, %arg16: memref<1x32xf32, #tpu.memory_space<vmem>>, %arg17: memref<32x2xf32, #tpu.memory_space<vmem>>, %arg18: memref<1x2xf32, #tpu.memory_space<vmem>>, %arg19: memref<16x2xf32, #tpu.memory_space<vmem>>) attributes {dimension_semantics = [#tpu.dimension_semantics<parallel>], iteration_bounds = array<i64: 2>, scalar_prefetch = 0 : i64, scratch_operands = 0 : i64, tpu.core_type = #tpu.core_type<tc>, window_params = [{transform_indices = @transform_0, window_bounds = array<i64: 16, 16>}, {transform_indices = @transform_1, window_bounds = array<i64: 16, 8>}, {transform_indices = @transform_2, window_bounds = array<i64: 16, 12>}, {pipeline_mode = #tpu.pipeline_mode<synchronous>, transform_indices = @transform_3, window_bounds = array<i64: 16, 32>}, {pipeline_mode = #tpu.pipeline_mode<synchronous>, transform_indices = @transform_4, window_bounds = array<i64: 8, 32>}, {pipeline_mode = #tpu.pipeline_mode<synchronous>, transform_indices = @transform_5, window_bounds = array<i64: 1, 32>}, {pipeline_mode = #tpu.pipeline_mode<synchronous>, transform_indices = @transform_6, window_bounds = array<i64: 32, 16>}, {pipeline_mode = #tpu.pipeline_mode<synchronous>, transform_indices = @transform_7, window_bounds = array<i64: 1, 16>}, {pipeline_mode = #tpu.pipeline_mode<synchronous>, transform_indices = @transform_8, window_bounds = array<i64: 8, 24>}, {pipeline_mode = #tpu.pipeline_mode<synchronous>, transform_indices = @transform_9, window_bounds = array<i64: 1, 24>}, {pipeline_mode = #tpu.pipeline_mode<synchronous>, transform_indices = @transform_10, window_bounds = array<i64: 24, 8>}, {pipeline_mode = #tpu.pipeline_mode<synchronous>, transform_indices = @transform_11, window_bounds = array<i64: 1, 8>}, {pipeline_mode = #tpu.pipeline_mode<synchronous>, transform_indices = @transform_12, window_bounds = array<i64: 16, 32>}, {pipeline_mode = #tpu.pipeline_mode<synchronous>, transform_indices = @transform_13, window_bounds = array<i64: 8, 32>}, {pipeline_mode = #tpu.pipeline_mode<synchronous>, transform_indices = @transform_14, window_bounds = array<i64: 12, 32>}, {pipeline_mode = #tpu.pipeline_mode<synchronous>, transform_indices = @transform_15, window_bounds = array<i64: 1, 32>}, {pipeline_mode = #tpu.pipeline_mode<synchronous>, transform_indices = @transform_16, window_bounds = array<i64: 32, 2>}, {pipeline_mode = #tpu.pipeline_mode<synchronous>, transform_indices = @transform_17, window_bounds = array<i64: 1, 2>}, {transform_indices = @transform_18, window_bounds = array<i64: 16, 2>}]} {
    %c0 = arith.constant 0 : index
    %c0_0 = arith.constant 0 : index
    %0 = vector.load %arg1[%c0, %c0_0] : memref<16x16xf32, #tpu.memory_space<vmem>>, vector<16x16xf32>
    %c0_1 = arith.constant 0 : index
    %c0_2 = arith.constant 0 : index
    %1 = vector.load %arg2[%c0_1, %c0_2] : memref<16x8xf32, #tpu.memory_space<vmem>>, vector<16x8xf32>
    %c0_3 = arith.constant 0 : index
    %c0_4 = arith.constant 0 : index
    %2 = vector.load %arg3[%c0_3, %c0_4] : memref<16x12xf32, #tpu.memory_space<vmem>>, vector<16x12xf32>
    %c0_5 = arith.constant 0 : index
    %c0_6 = arith.constant 0 : index
    %3 = vector.load %arg4[%c0_5, %c0_6] : memref<16x32xf32, #tpu.memory_space<vmem>>, vector<16x32xf32>
    %cst = arith.constant dense<0.000000e+00> : vector<16x32xf32>
    %4 = tpu.matmul %0, %3, %cst {dimension_numbers = #tpu.dot_dimension_numbers<[1], [0], [0], [1], [0, 0, 1, 1], [], []>} : vector<16x16xf32>, vector<16x32xf32>, vector<16x32xf32> -> vector<16x32xf32>
    %c0_7 = arith.constant 0 : index
    %c0_8 = arith.constant 0 : index
    %5 = vector.load %arg5[%c0_7, %c0_8] : memref<8x32xf32, #tpu.memory_space<vmem>>, vector<8x32xf32>
    %cst_9 = arith.constant dense<0.000000e+00> : vector<16x32xf32>
    %6 = tpu.matmul %1, %5, %cst_9 {dimension_numbers = #tpu.dot_dimension_numbers<[1], [0], [0], [1], [0, 0, 1, 1], [], []>} : vector<16x8xf32>, vector<8x32xf32>, vector<16x32xf32> -> vector<16x32xf32>
    %7 = arith.addf %4, %6 : vector<16x32xf32>
    %c0_10 = arith.constant 0 : index
    %c0_11 = arith.constant 0 : index
    %8 = vector.load %arg6[%c0_10, %c0_11] : memref<1x32xf32, #tpu.memory_space<vmem>>, vector<1x32xf32>
    %9 = vector.broadcast %8 : vector<1x32xf32> to vector<16x32xf32>
    %10 = arith.addf %7, %9 : vector<16x32xf32>
    %11 = math.tanh %10 : vector<16x32xf32>
    %c0_12 = arith.constant 0 : index
    %c0_13 = arith.constant 0 : index
    %12 = vector.load %arg7[%c0_12, %c0_13] : memref<32x16xf32, #tpu.memory_space<vmem>>, vector<32x16xf32>
    %cst_14 = arith.constant dense<0.000000e+00> : vector<16x16xf32>
    %13 = tpu.matmul %11, %12, %cst_14 {dimension_numbers = #tpu.dot_dimension_numbers<[1], [0], [0], [1], [0, 0, 1, 1], [], []>} : vector<16x32xf32>, vector<32x16xf32>, vector<16x16xf32> -> vector<16x16xf32>
    %c0_15 = arith.constant 0 : index
    %c0_16 = arith.constant 0 : index
    %14 = vector.load %arg8[%c0_15, %c0_16] : memref<1x16xf32, #tpu.memory_space<vmem>>, vector<1x16xf32>
    %15 = vector.broadcast %14 : vector<1x16xf32> to vector<16x16xf32>
    %16 = arith.addf %13, %15 : vector<16x16xf32>
    %c0_17 = arith.constant 0 : index
    %c0_18 = arith.constant 0 : index
    %17 = vector.load %arg9[%c0_17, %c0_18] : memref<8x24xf32, #tpu.memory_space<vmem>>, vector<8x24xf32>
    %cst_19 = arith.constant dense<0.000000e+00> : vector<16x24xf32>
    %18 = tpu.matmul %1, %17, %cst_19 {dimension_numbers = #tpu.dot_dimension_numbers<[1], [0], [0], [1], [0, 0, 1, 1], [], []>} : vector<16x8xf32>, vector<8x24xf32>, vector<16x24xf32> -> vector<16x24xf32>
    %c0_20 = arith.constant 0 : index
    %c0_21 = arith.constant 0 : index
    %19 = vector.load %arg10[%c0_20, %c0_21] : memref<1x24xf32, #tpu.memory_space<vmem>>, vector<1x24xf32>
    %20 = vector.broadcast %19 : vector<1x24xf32> to vector<16x24xf32>
    %21 = arith.addf %18, %20 : vector<16x24xf32>
    %22 = math.tanh %21 : vector<16x24xf32>
    %c0_22 = arith.constant 0 : index
    %c0_23 = arith.constant 0 : index
    %23 = vector.load %arg11[%c0_22, %c0_23] : memref<24x8xf32, #tpu.memory_space<vmem>>, vector<24x8xf32>
    %cst_24 = arith.constant dense<0.000000e+00> : vector<16x8xf32>
    %24 = tpu.matmul %22, %23, %cst_24 {dimension_numbers = #tpu.dot_dimension_numbers<[1], [0], [0], [1], [0, 0, 1, 1], [], []>} : vector<16x24xf32>, vector<24x8xf32>, vector<16x8xf32> -> vector<16x8xf32>
    %c0_25 = arith.constant 0 : index
    %c0_26 = arith.constant 0 : index
    %25 = vector.load %arg12[%c0_25, %c0_26] : memref<1x8xf32, #tpu.memory_space<vmem>>, vector<1x8xf32>
    %26 = vector.broadcast %25 : vector<1x8xf32> to vector<16x8xf32>
    %27 = arith.addf %24, %26 : vector<16x8xf32>
    %c0_27 = arith.constant 0 : index
    %c0_28 = arith.constant 0 : index
    %28 = vector.load %arg13[%c0_27, %c0_28] : memref<16x32xf32, #tpu.memory_space<vmem>>, vector<16x32xf32>
    %cst_29 = arith.constant dense<0.000000e+00> : vector<16x32xf32>
    %29 = tpu.matmul %16, %28, %cst_29 {dimension_numbers = #tpu.dot_dimension_numbers<[1], [0], [0], [1], [0, 0, 1, 1], [], []>} : vector<16x16xf32>, vector<16x32xf32>, vector<16x32xf32> -> vector<16x32xf32>
    %c0_30 = arith.constant 0 : index
    %c0_31 = arith.constant 0 : index
    %30 = vector.load %arg14[%c0_30, %c0_31] : memref<8x32xf32, #tpu.memory_space<vmem>>, vector<8x32xf32>
    %cst_32 = arith.constant dense<0.000000e+00> : vector<16x32xf32>
    %31 = tpu.matmul %27, %30, %cst_32 {dimension_numbers = #tpu.dot_dimension_numbers<[1], [0], [0], [1], [0, 0, 1, 1], [], []>} : vector<16x8xf32>, vector<8x32xf32>, vector<16x32xf32> -> vector<16x32xf32>
    %32 = arith.addf %29, %31 : vector<16x32xf32>
    %c0_33 = arith.constant 0 : index
    %c0_34 = arith.constant 0 : index
    %33 = vector.load %arg15[%c0_33, %c0_34] : memref<12x32xf32, #tpu.memory_space<vmem>>, vector<12x32xf32>
    %cst_35 = arith.constant dense<0.000000e+00> : vector<16x32xf32>
    %34 = tpu.matmul %2, %33, %cst_35 {dimension_numbers = #tpu.dot_dimension_numbers<[1], [0], [0], [1], [0, 0, 1, 1], [], []>} : vector<16x12xf32>, vector<12x32xf32>, vector<16x32xf32> -> vector<16x32xf32>
    %35 = arith.addf %32, %34 : vector<16x32xf32>
    %c0_36 = arith.constant 0 : index
    %c0_37 = arith.constant 0 : index
    %36 = vector.load %arg16[%c0_36, %c0_37] : memref<1x32xf32, #tpu.memory_space<vmem>>, vector<1x32xf32>
    %37 = vector.broadcast %36 : vector<1x32xf32> to vector<16x32xf32>
    %38 = arith.addf %35, %37 : vector<16x32xf32>
    %39 = math.tanh %38 : vector<16x32xf32>
    %c0_38 = arith.constant 0 : index
    %c0_39 = arith.constant 0 : index
    %40 = vector.load %arg17[%c0_38, %c0_39] : memref<32x2xf32, #tpu.memory_space<vmem>>, vector<32x2xf32>
    %cst_40 = arith.constant dense<0.000000e+00> : vector<16x2xf32>
    %41 = tpu.matmul %39, %40, %cst_40 {dimension_numbers = #tpu.dot_dimension_numbers<[1], [0], [0], [1], [0, 0, 1, 1], [], []>} : vector<16x32xf32>, vector<32x2xf32>, vector<16x2xf32> -> vector<16x2xf32>
    %c0_41 = arith.constant 0 : index
    %c0_42 = arith.constant 0 : index
    %42 = vector.load %arg18[%c0_41, %c0_42] : memref<1x2xf32, #tpu.memory_space<vmem>>, vector<1x2xf32>
    %43 = vector.broadcast %42 : vector<1x2xf32> to vector<16x2xf32>
    %44 = arith.addf %41, %43 : vector<16x2xf32>
    %c0_43 = arith.constant 0 : index
    %c0_44 = arith.constant 0 : index
    %45 = vector.load %arg19[%c0_43, %c0_44] : memref<16x2xf32, #tpu.memory_space<vmem>>, vector<16x2xf32>
    tpu.vector_store %arg19[%c0_43, %c0_44], %44 {strides = array<i32>} : memref<16x2xf32, #tpu.memory_space<vmem>>, vector<16x2xf32>,
    return
  }
  func.func @transform_0(%arg0: i32) -> (i32, i32) {
    %c0_i32 = arith.constant 0 : i32
    %c0_i32_0 = arith.constant 0 : i32
    return %arg0, %c0_i32 : i32, i32
  }
  func.func @transform_1(%arg0: i32) -> (i32, i32) {
    %c0_i32 = arith.constant 0 : i32
    %c0_i32_0 = arith.constant 0 : i32
    return %arg0, %c0_i32 : i32, i32
  }
  func.func @transform_2(%arg0: i32) -> (i32, i32) {
    %c0_i32 = arith.constant 0 : i32
    %c0_i32_0 = arith.constant 0 : i32
    return %arg0, %c0_i32 : i32, i32
  }
  func.func @transform_3(%arg0: i32) -> (i32, i32) {
    %c0_i32 = arith.constant 0 : i32
    %c0_i32_0 = arith.constant 0 : i32
    %c0_i32_1 = arith.constant 0 : i32
    return %c0_i32, %c0_i32_0 : i32, i32
  }
  func.func @transform_4(%arg0: i32) -> (i32, i32) {
    %c0_i32 = arith.constant 0 : i32
    %c0_i32_0 = arith.constant 0 : i32
    %c0_i32_1 = arith.constant 0 : i32
    return %c0_i32, %c0_i32_0 : i32, i32
  }
  func.func @transform_5(%arg0: i32) -> (i32, i32) {
    %c0_i32 = arith.constant 0 : i32
    %c0_i32_0 = arith.constant 0 : i32
    %c0_i32_1 = arith.constant 0 : i32
    return %c0_i32, %c0_i32_0 : i32, i32
  }
  func.func @transform_6(%arg0: i32) -> (i32, i32) {
    %c0_i32 = arith.constant 0 : i32
    %c0_i32_0 = arith.constant 0 : i32
    %c0_i32_1 = arith.constant 0 : i32
    return %c0_i32, %c0_i32_0 : i32, i32
  }
  func.func @transform_7(%arg0: i32) -> (i32, i32) {
    %c0_i32 = arith.constant 0 : i32
    %c0_i32_0 = arith.constant 0 : i32
    %c0_i32_1 = arith.constant 0 : i32
    return %c0_i32, %c0_i32_0 : i32, i32
  }
  func.func @transform_8(%arg0: i32) -> (i32, i32) {
    %c0_i32 = arith.constant 0 : i32
    %c0_i32_0 = arith.constant 0 : i32
    %c0_i32_1 = arith.constant 0 : i32
    return %c0_i32, %c0_i32_0 : i32, i32
  }
  func.func @transform_9(%arg0: i32) -> (i32, i32) {
    %c0_i32 = arith.constant 0 : i32
    %c0_i32_0 = arith.constant 0 : i32
    %c0_i32_1 = arith.constant 0 : i32
    return %c0_i32, %c0_i32_0 : i32, i32
  }
  func.func @transform_10(%arg0: i32) -> (i32, i32) {
    %c0_i32 = arith.constant 0 : i32
    %c0_i32_0 = arith.constant 0 : i32
    %c0_i32_1 = arith.constant 0 : i32
    return %c0_i32, %c0_i32_0 : i32, i32
  }
  func.func @transform_11(%arg0: i32) -> (i32, i32) {
    %c0_i32 = arith.constant 0 : i32
    %c0_i32_0 = arith.constant 0 : i32
    %c0_i32_1 = arith.constant 0 : i32
    return %c0_i32, %c0_i32_0 : i32, i32
  }
  func.func @transform_12(%arg0: i32) -> (i32, i32) {
    %c0_i32 = arith.constant 0 : i32
    %c0_i32_0 = arith.constant 0 : i32
    %c0_i32_1 = arith.constant 0 : i32
    return %c0_i32, %c0_i32_0 : i32, i32
  }
  func.func @transform_13(%arg0: i32) -> (i32, i32) {
    %c0_i32 = arith.constant 0 : i32
    %c0_i32_0 = arith.constant 0 : i32
    %c0_i32_1 = arith.constant 0 : i32
    return %c0_i32, %c0_i32_0 : i32, i32
  }
  func.func @transform_14(%arg0: i32) -> (i32, i32) {
    %c0_i32 = arith.constant 0 : i32
    %c0_i32_0 = arith.constant 0 : i32
    %c0_i32_1 = arith.constant 0 : i32
    return %c0_i32, %c0_i32_0 : i32, i32
  }
  func.func @transform_15(%arg0: i32) -> (i32, i32) {
    %c0_i32 = arith.constant 0 : i32
    %c0_i32_0 = arith.constant 0 : i32
    %c0_i32_1 = arith.constant 0 : i32
    return %c0_i32, %c0_i32_0 : i32, i32
  }
  func.func @transform_16(%arg0: i32) -> (i32, i32) {
    %c0_i32 = arith.constant 0 : i32
    %c0_i32_0 = arith.constant 0 : i32
    %c0_i32_1 = arith.constant 0 : i32
    return %c0_i32, %c0_i32_0 : i32, i32
  }
  func.func @transform_17(%arg0: i32) -> (i32, i32) {
    %c0_i32 = arith.constant 0 : i32
    %c0_i32_0 = arith.constant 0 : i32
    %c0_i32_1 = arith.constant 0 : i32
    return %c0_i32, %c0_i32_0 : i32, i32
  }
  func.func @transform_18(%arg0: i32) -> (i32, i32) {
    %c0_i32 = arith.constant 0 : i32
    %c0_i32_0 = arith.constant 0 : i32
    return %arg0, %c0_i32 : i32, i32
  }
}

</mosaic_0001>

<bundles_post_ra>
// kernel: tpu_custom_call.1
= control target key start
LH: loop header
LB: loop body
LE: loop exit
PB: predicated region body
PF: predicated region fallthrough
CT: control target
= control target key end

     0   :  { %s1786_s27 = smov 0   ;;  %s1909_s0 = inlined_call_operand.vmem [shape: f32[32,16], index: 0, kind: input, shape index: {}]   ;;  %s1910_s1 = inlined_call_operand.vmem [shape: f32[32,8], index: 1, kind: input, shape index: {}]   ;;  %s1911_s2 = inlined_call_operand.vmem [shape: f32[32,12], index: 2, kind: input, shape index: {}]   ;;  %s1912_s3 = inlined_call_operand.vmem [shape: f32[16,32], index: 3, kind: input, shape index: {}]   ;;  %s1913_s4 = inlined_call_operand.vmem [shape: f32[8,32], index: 4, kind: input, shape index: {}]   ;;  %s1914_s5 = inlined_call_operand.vmem [shape: f32[1,32], index: 5, kind: input, shape index: {}]   ;;  %s1915_s6 = inlined_call_operand.vmem [shape: f32[32,16], index: 6, kind: input, shape index: {}]   ;;  %s1916_s7 = inlined_call_operand.vmem [shape: f32[1,16], index: 7, kind: input, shape index: {}]   ;;  %s1917_s8 = inlined_call_operand.vmem [shape: f32[8,24], index: 8, kind: input, shape index: {}]   ;;  %s1918_s9 = inlined_call_operand.vmem [shape: f32[1,24], index: 9, kind: input, shape index: {}]   ;;  %s1919_s10 = inlined_call_operand.vmem [shape: f32[24,8], index: 10, kind: input, shape index: {}]   ;;  %s1920_s11 = inlined_call_operand.vmem [shape: f32[1,8], index: 11, kind: input, shape index: {}]   ;;  %s1921_s12 = inlined_call_operand.vmem [shape: f32[16,32], index: 12, kind: input, shape index: {}]   ;;  %s1922_s13 = inlined_call_operand.vmem [shape: f32[8,32], index: 13, kind: input, shape index: {}]   ;;  %s1923_s14 = inlined_call_operand.vmem [shape: f32[12,32], index: 14, kind: input, shape index: {}]   ;;  %s1924_s15 = inlined_call_operand.vmem [shape: f32[1,32], index: 15, kind: input, shape index: {}]   ;;  %s1925_s16 = inlined_call_operand.vmem [shape: f32[32,2], index: 16, kind: input, shape index: {}]   ;;  %s1926_s17 = inlined_call_operand.vmem [shape: f32[1,2], index: 17, kind: input, shape index: {}]   ;;  %s1927_s18 = inlined_call_operand.vmem [shape: f32[32,2], index: 18, kind: output, shape index: {}]  }
   0x1   :  { %1928 = sst [smem:[#allocation2_spill]] %s1909_s0 }
   0x2   :  { %1929 = sst [smem:[#allocation3_spill]] %s1910_s1 }
   0x3   :  { %1930 = sst [smem:[#allocation4_spill]] %s1911_s2 }
   0x4 LB: > { %s1518_s28 = sadd.s32 4294967295, %s1689_s27   ;;  %p1522_p0 = scmp.ge.s32.totalorder %s1689_s27, 1  ;;  %s1689_s27 = sphi %s1786_s27, %s28_s27  }
   0x5   : > { %p535_p1 = scmp.lt.s32.totalorder %s1689_s27, 3 }
   0x7   : > { %p536_p2 = pnand %p1522_p0, %p535_p1 }
   0x8   : > { %s1523_s21 = sshll.u32 (!%p536_p2), %s1518_s28, 1  ;;  %s1931_s26 = sld [smem:[#allocation3_spill]] (!%p536_p2) }
   0x9   : > { %539 = sbr.rel (%p536_p2) target bundleno = 850 (0x352), region = 92  ;;  %p600_p3 = scmp.lt.s32.totalorder (!%p536_p2), %s1523_s21, 3 }
   0xa   : > { %s1932_s0 = sld [smem:[#allocation2_spill]] (!%p536_p2) }
   0xb   : > { %s1933_s25 = sld [smem:[#allocation4_spill]] (!%p536_p2) }
   0xe   : > { %v630_v0 = vld [vmem:[%s1912_s3 + $0x8] sm:$0xff]  ;;  %v629_v1 = vld [vmem:[%s1912_s3] sm:$0xff]  ;;  %s1935_s21 = smov (!%p600_p3, %s1523_s21), 3  ;;  %vm632_vm0 = vcmask 64512   ;;  %vm714_vm1 = vcmask 130048   ;;  %v810_v8 = vld [vmem:[%s1915_s6 + $0x18] sm:$0xff] }
   0xf   : > { %v631_v2 = vld [vmem:[%s1913_s4] sm:$0xff]  ;;  %1601 = vmatprep.subr.mxu1 %v630_v0  ;;  %s1806_s23 = sshll.u32 %s1935_s21, 3  ;;  %v809_v9 = vld [vmem:[%s1915_s6 + $0x10] sm:$0xff]  ;;  %v986_v11 = vld [vmem:[%s1919_s10 + $0x8] sm:$0xff]  ;;  %vm818_vm2 = vcmask 261120   ;;  %vm995_vm3 = vcmask 195584  }
  0x10   : > { %1596 = vmatprep.subr.mxu0 %v631_v2  ;;  %1602 = vmatpush3.msra.mxu1 %v630_v0  ;;  %v900_v3 = vld [vmem:[%s1917_s8] sm:$0xff]  ;;  %s609_s28 = scalar_lea.vmem %s1931_s26, %s1806_s23  ;;  %s603_s19 = scalar_lea.vmem %s1932_s0, %s1806_s23  ;;  %v987_v10 = vld [vmem:[%s1919_s10 + $0x10] sm:$0xff]  ;;  %v808_v12 = vld [vmem:[%s1915_s6 + $0x8] sm:$0xff]  ;;  %vm1251_vm4 = vcmask 1043456   ;;  %vm1244_vm5 = vcmask 97280   ;;  %vm1435_vm6 = vcmask 15360  }
  0x11   : > { %1597 = vmatpush3.msra.mxu0 %v631_v2  ;;  %1603 = vmatprep.subr.mxu1 %v629_v1  ;;  %v625_v4 = vld [vmem:[%s609_s28] sm:$0xff]  ;;  %v626_v5 = vld [vmem:[%s609_s28 + $0x8] sm:$0xff]  ;;  %s615_s26 = scalar_lea.vmem %s1933_s25, %s1806_s23  ;;  %v1346_v50 = vld [vmem:[%s1925_s16 + $0x18] sm:$0xff]  ;;  %s621_s0 = scalar_lea.vmem %s1927_s18, %s1806_s23 }
  0x12   : > { %1604 = vmatpush3.msra.mxu1 %v629_v1  ;;  %v623_v6 = vld [vmem:[%s603_s19] sm:$0xff]  ;;  %1598 = vmatprep.mubr.msk.f32.mxu0 %vm632_vm0, %v625_v4  ;;  %v624_v7 = vld [vmem:[%s603_s19 + $0x8] sm:$0xff]  ;;  %v1345_v51 = vld [vmem:[%s1925_s16 + $0x10] sm:$0xff] }
  0x13   : > { %1619 = vmatprep.subr.mxu1 %v900_v3  ;;  %1605 = vmatprep.mubr.msk.f32.mxu1 %vm714_vm1, %v623_v6  ;;  %v807_v13 = vld [vmem:[%s1915_s6] sm:$0xff]  ;;  %v1078_v33 = vld [vmem:[%s1921_s12 + $0x8] sm:$0xff] }
  0x14   : > { %1599 = vmatmul.mubr.msk.f32.vlgmr.msra.gmra.mxu0 %vm632_vm0, %v626_v5  ;;  %1606 = vmatmul.mubr.msk.f32.vlgmr.msra.gmra.mxu1 %vm714_vm1, %v624_v7  ;;  %v985_v14 = vld [vmem:[%s1919_s10] sm:$0xff]  ;;  %v1243_v36 = vld [vmem:[%s1923_s14 + $0x8] sm:$0xf] }
  0x15   : > { %1620 = vmatpush3.msra.mxu1 %v900_v3  ;;  %1621 = vmatprep.mubr.msk.f32.mxu1 %vm632_vm0, %v625_v4  ;;  %v1535_v18 = vld [vmem:[%s1914_s5] ss:$0 sm:$0xff]  ;;  %v628_v49 = vld [vmem:[%s615_s26 + $0x8] sm:$0xff] }
  0x16   : > { %1608 = vmatprep.subr.mxu0 %v810_v8  ;;  %1624 = vmatprep.subr.mxu1 %v987_v10  ;;  %v1539_v22 = vld [vmem:[%s1918_s9] ss:$0 sm:$0xff]  ;;  %v1344_v52 = vld [vmem:[%s1925_s16 + $0x8] sm:$0xff] }
  0x17   : > { %1609 = vmatpush3.msra.mxu0 %v810_v8  ;;  %v1079_v34 = vld [vmem:[%s1922_s13] sm:$0xff] }
  0x18   : > { %1622 = vmatmul.mubr.msk.f32.vlgmr.msra.gmra.mxu1 %vm632_vm0, %v626_v5  ;;  %1610 = vmatprep.subr.mxu0 %v809_v9  ;;  %v1077_v35 = vld [vmem:[%s1921_s12] sm:$0xff] }
  0x19   : > { %1625 = vmatpush3.msra.mxu1 %v987_v10  ;;  %1611 = vmatpush3.msra.mxu0 %v809_v9  ;;  %v1536_v38 = vld [vmem:[%s1916_s7] ss:$0 sm:$0xff] }
  0x1a   : > { %1626 = vmatprep.subr.mxu1 %v986_v11  ;;  %1612 = vmatprep.subr.mxu0 %v808_v12  ;;  %v1542_v42 = vld [vmem:[%s1920_s11] ss:$0 sm:$0xff] }
  0x1b   : > { %1627 = vmatpush3.msra.mxu1 %v986_v11  ;;  %1613 = vmatpush3.msra.mxu0 %v808_v12  ;;  %v627_v47 = vld [vmem:[%s615_s26] sm:$0xff] }
  0x1c   : > { %1614 = vmatprep.subr.mxu0 %v807_v13  ;;  %1628 = vmatprep.subr.mxu1 %v985_v14  ;;  %v1242_v48 = vld [vmem:[%s1923_s14] sm:$0xff] }
  0x1d   : > { %1615 = vmatpush3.msra.mxu0 %v807_v13  ;;  %1629 = vmatpush3.msra.mxu1 %v985_v14  ;;  %v1343_v53 = vld [vmem:[%s1925_s16] sm:$0xff] }
  0x1e   : > { %1638 = vmatprep.subr.mxu0 %v1078_v33  ;;  %1633 = vmatprep.subr.mxu1 %v1079_v34  ;;  %v1552_v62 = vld [vmem:[%s1924_s15] ss:$0 sm:$0xff] }
  0x1f   : > { %v1553_v6 = vld [vmem:[%s1926_s17] ss:$0 sm:$0xff] }
  0xd4   : > { %v1600_v15 = vpop.f32.mrf.mxu0  ;;  %v1607_v16 = vpop.f32.mrf.mxu1 }
  0xd5   : > { %v793_v17 = vadd.f32 %v1607_v16, %v1600_v15 }
  0xd6   : > { %v705_v19 = vpop.f32.mrf.mxu0  ;;  %v787_v20 = vpop.f32.mrf.mxu1 }
  0xd7   : > { %v788_v21 = vadd.f32 %v787_v20, %v705_v19  ;;  %v804_v23 = vadd.f32 %v1535_v18, %v793_v17 }
  0xd8   : > { %v1623_v24 = vpop.f32.mrf.mxu1 }
  0xd9   : > { %v803_v25 = vadd.f32 %v1535_v18, %v788_v21  ;;  %v980_v26 = vadd.f32 %v1623_v24, %v1539_v22 }
  0xda   : > { %v974_v27 = vpop.f32.mrf.mxu1 }
  0xdb   : > { %1671 = vtanh.f32 %v803_v25  ;;  %v975_v28 = vadd.f32 %v1539_v22, %v974_v27 }
  0xdc   : > { %1673 = vtanh.f32 %v804_v23 }
  0xdd   : > { %1675 = vtanh.f32 %v975_v28 }
  0xde   : > { %1677 = vtanh.f32 %v980_v26 }
  0xe8   : > { %v1672_v29 = vpop.eup %1671 }
  0xe9   : > { %v1674_v30 = vpop.eup %1673  ;;  %1616 = vmatprep.mubr.msk.f32.mxu0 %vm818_vm2, %v1672_v29 }
  0xea   : > { %v1676_v31 = vpop.eup %1675  ;;  %1617 = vmatmul.mubr.msk.f32.vlgmr.msra.gmra.mxu0 %vm818_vm2, %v1674_v30 }
  0xeb   : > { %v1678_v32 = vpop.eup %1677  ;;  %1630 = vmatprep.mubr.msk.f32.mxu1 %vm995_vm3, %v1676_v31  ;;  %1639 = vmatpush3.msra.mxu0 %v1078_v33 }
  0xec   : > { %1631 = vmatmul.mubr.msk.f32.vlgmr.msra.gmra.mxu1 %vm995_vm3, %v1678_v32  ;;  %1640 = vmatprep.subr.mxu0 %v1077_v35 }
  0xed   : > { %1634 = vmatpush3.msra.mxu1 %v1079_v34  ;;  %1641 = vmatpush3.msra.mxu0 %v1077_v35 }
  0xee   : > { %1645 = vmatprep.subr.msk.mxu1 %vm1251_vm4, %v1243_v36  ;;  %1652 = vmatprep.subr.mxu0 %v1346_v50 }
 0x1aa   : > { %v1618_v37 = vpop.f32.mrf.mxu0 }
 0x1ab   : > { %v897_v43 = vadd.f32 %v1618_v37, %v1536_v38 }
 0x1ac   : > { %v891_v39 = vpop.f32.mrf.mxu0  ;;  %v1632_v40 = vpop.f32.mrf.mxu1 }
 0x1ad   : > { %v892_v41 = vadd.f32 %v1536_v38, %v891_v39  ;;  %v1074_v46 = vadd.f32 %v1632_v40, %v1542_v42 }
 0x1ae   : > { %v1068_v44 = vpop.f32.mrf.mxu1 }
 0x1af   : > { %v1069_v45 = vadd.f32 %v1542_v42, %v1068_v44  ;;  %1642 = vmatprep.mubr.msk.f32.mxu0 %vm714_vm1, %v892_v41 }
 0x1b0   : > { %1643 = vmatmul.mubr.msk.f32.vlgmr.msra.gmra.mxu0 %vm714_vm1, %v897_v43 }
 0x1b1   : > { %1635 = vmatprep.mubr.msk.f32.mxu1 %vm632_vm0, %v1069_v45  ;;  %1653 = vmatpush3.msra.mxu0 %v1346_v50 }
 0x1b2   : > { %1636 = vmatmul.mubr.msk.f32.vlgmr.msra.gmra.mxu1 %vm632_vm0, %v1074_v46  ;;  %1654 = vmatprep.subr.mxu0 %v1345_v51 }
 0x1b3   : > { %1646 = vmatpush3.msk.msra.mxu1 %vm1251_vm4, %v1243_v36  ;;  %1649 = vmatprep.mubr.msk.f32.mxu1 %vm1244_vm5, %v627_v47 }
 0x1b4   : > { %1647 = vmatprep.subr.mxu1 %v1242_v48  ;;  %1655 = vmatpush3.msra.mxu0 %v1345_v51 }
 0x1b5   : > { %1648 = vmatpush3.msra.mxu1 %v1242_v48  ;;  %1656 = vmatprep.subr.mxu0 %v1344_v52 }
 0x1b6   : > { %1650 = vmatmul.mubr.msk.f32.vlgmr.msra.gmra.mxu1 %vm1244_vm5, %v628_v49  ;;  %1657 = vmatpush3.msra.mxu0 %v1344_v52 }
 0x1b7   : > { %1658 = vmatprep.subr.mxu0 %v1343_v53 }
 0x1b8   : > { %1659 = vmatpush3.msra.mxu0 %v1343_v53 }
 0x270   : > { %v1644_v54 = vpop.f32.mrf.mxu0 }
 0x272   : > { %v1637_v55 = vpop.f32.mrf.mxu1  ;;  %v1233_v58 = vpop.f32.mrf.mxu0 }
 0x273   : > { %v1239_v57 = vadd.f32 %v1644_v54, %v1637_v55 }
 0x274   : > { %v1152_v56 = vpop.f32.mrf.mxu1 }
 0x275   : > { %v1234_v60 = vadd.f32 %v1233_v58, %v1152_v56 }
 0x276   : > { %v1651_v59 = vpop.f32.mrf.mxu1 }
 0x277   : > { %v1331_v61 = vadd.f32 %v1651_v59, %v1239_v57 }
 0x278   : > { %v1321_v63 = vpop.f32.mrf.mxu1 }
 0x279   : > { %v1330_v0 = vadd.f32 %v1321_v63, %v1234_v60  ;;  %v1340_v1 = vadd.f32 %v1552_v62, %v1331_v61 }
 0x27b   : > { %v1339_v2 = vadd.f32 %v1552_v62, %v1330_v0 }
 0x27d   : > { %1679 = vtanh.f32 %v1339_v2 }
 0x27e   : > { %1681 = vtanh.f32 %v1340_v1 }
 0x28a   : > { %v1680_v3 = vpop.eup %1679 }
 0x28b   : > { %v1682_v4 = vpop.eup %1681  ;;  %1660 = vmatprep.mubr.msk.f32.mxu0 %vm818_vm2, %v1680_v3 }
 0x28c   : > { %1661 = vmatmul.mubr.msk.f32.vlgmr.msra.gmra.mxu0 %vm818_vm2, %v1682_v4 }
 0x34c   : > { %v1662_v5 = vpop.f32.mrf.mxu0 }
 0x34d   : > { %v1432_v9 = vadd.f32 %v1662_v5, %v1553_v6 }
 0x34e   : > { %v1426_v7 = vpop.f32.mrf.mxu0 }
 0x34f   : > { %v1427_v8 = vadd.f32 %v1553_v6, %v1426_v7  ;;  %1437 = vst.msk [vmem:[%s621_s0 + $0x8] sm:$0xff] %vm1435_vm6, %v1432_v9 }
 0x351   : > { %1436 = vst.msk [vmem:[%s621_s0] sm:$0xff] %vm1435_vm6, %v1427_v8 }
 0x352 PF: > { %s28_s27 = sadd.s32 1, %s1689_s27  }
 0x353   : > { %p25_p4 = scmp.ge.s32.totalorder %s28_s27, 4  }
 0x355   :  { %27 = sbr.rel (!%p25_p4) target bundleno = 4 (0x4), region = 128 }

</bundles_post_ra>
